<compile_context>
chip_gen: v6e
topology: v6e:2x2x1
jax: 0.10.0
libtpu: 0.0.40
codegen_flags: <defaults>
</compile_context>

<pallas_src>
import functools
import math

import jax
import jax.numpy as jnp
from jax import lax
from jax.experimental import pallas as pl
from jax.experimental.pallas import tpu as pltpu

_SMOOTH = 1e-05


def _bce_dice_kernel(x_ref, t_ref, bce_ref, inter_ref, sin_ref, stg_ref,
                     *, rows, tile, num_tiles, valid_last):
    """Streams one (rows, tile) block per grid step and updates per-row sums.

    Outputs (each (rows, 1) f32, used as resident accumulators):
      bce_ref   : sum of stable BCE-with-logits terms over the row
      inter_ref : sum of sigmoid(x) * t over the row
      sin_ref   : sum of sigmoid(x) over the row
      stg_ref   : sum of t over the row
    """
    s = pl.program_id(0)

    @pl.when(s == 0)
    def _init():
        bce_ref[...] = jnp.zeros_like(bce_ref)
        inter_ref[...] = jnp.zeros_like(inter_ref)
        sin_ref[...] = jnp.zeros_like(sin_ref)
        stg_ref[...] = jnp.zeros_like(stg_ref)

    def _accumulate(x, t):
        # Shared transcendentals: one exp + one log per element.
        e = jnp.exp(-jnp.abs(x))                       # exp(-|x|) in (0, 1]
        one_plus_e = 1.0 + e
        log_term = jnp.log(one_plus_e)                 # == log1p(exp(-|x|))
        # Numerically stable BCE-with-logits: max(x,0) - x*t + log(1+exp(-|x|))
        bce_elem = jnp.maximum(x, 0.0) - x * t + log_term
        # Exact sigmoid from the same exp; approx reciprocal stays on the EUP.
        inv = pl.reciprocal(one_plus_e, approx=True)
        sig = jnp.where(x >= 0.0, inv, e * inv)

        bce_ref[...] += jnp.sum(bce_elem, axis=-1, keepdims=True)
        inter_ref[...] += jnp.sum(sig * t, axis=-1, keepdims=True)
        sin_ref[...] += jnp.sum(sig, axis=-1, keepdims=True)
        stg_ref[...] += jnp.sum(t, axis=-1, keepdims=True)

    x = x_ref[...].astype(jnp.float32)
    t = t_ref[...].astype(jnp.float32)

    if valid_last == tile:
        # HW/G divides the tile evenly: fully mask-free hot path.
        _accumulate(x, t)
    else:
        # Only the statically-ragged last block pays for masking.
        @pl.when(s < num_tiles - 1)
        def _full_block():
            _accumulate(x, t)

        @pl.when(s == num_tiles - 1)
        def _ragged_block():
            lane = lax.broadcasted_iota(jnp.int32, (rows, tile), 1)
            valid = lane < valid_last
            # logits -> -1e9, targets -> 0 in padded lanes: contributes exactly
            # zero to BCE, sigmoid-sum, intersection and target-sum.
            _accumulate(jnp.where(valid, x, -1e9),
                        jnp.where(valid, t, 0.0))


def _tile_plan(rows, hw_per_row, itemsize):
    """Pick the lane tile and scoped-VMEM limit, keyed off the TPU generation."""
    vmem_cap = 64 * 1024 * 1024
    try:
        vmem_cap = int(getattr(pltpu.get_tpu_info(), "vmem_capacity_bytes",
                               vmem_cap))
    except Exception:   # conservative fallback if hardware query is unavailable
        pass
    if vmem_cap >= 100 * 1024 * 1024:      # v5e / v6e: 128 MiB physical VMEM
        budget = 24 * 1024 * 1024
        lane_cap = 16384
        vmem_limit = 64 * 1024 * 1024
    else:                                  # v7x: 64 MiB physical VMEM
        budget = 8 * 1024 * 1024
        lane_cap = 8192
        vmem_limit = 32 * 1024 * 1024

    # 2 inputs x 2 pipeline buffers of (rows, tile) in the caller dtype.
    max_tile = budget // max(1, 4 * rows * itemsize)
    if max_tile >= hw_per_row:
        tile = hw_per_row                  # single full-extent block
    else:
        # For extremely large N*C even tile=128 may exceed `budget`; the
        # scoped vmem_limit below still leaves plenty of headroom for that.
        tile = max(128, (max_tile // 128) * 128)
        tile = min(tile, lane_cap)
    return tile, vmem_limit


def bce_dice_loss_synapse(logits, target, *, tile=None):
    """BCE-with-logits + mean soft-dice loss over channels 1..8 (synapse).

    logits, target: (N, C, H, W) with C >= 9. Inputs are streamed in their own
    dtype (pass bf16 / int8 targets to halve HBM traffic); compute and
    accumulation are f32. Returns a scalar f32 loss.
    """
    n, c, h, w = logits.shape
    assert target.shape == logits.shape
    assert c >= 9, "BCEDiceLoss_synapse requires at least 9 channels"
    hw = h * w

    # Fold spatial chunks into extra rows so the row count is a multiple of 8
    # (dense sublanes). Pure row-major reshape -- no HBM copy.
    rows0 = n * c
    g = 8 // math.gcd(rows0, 8)
    G = g if (g > 1 and hw % g == 0 and (hw // g) >= 256) else 1
    rows = rows0 * G
    hw_per_row = hw // G
    x2 = logits.reshape(rows, hw_per_row)
    t2 = target.reshape(rows, hw_per_row)

    itemsize = max(jnp.dtype(logits.dtype).itemsize,
                   jnp.dtype(target.dtype).itemsize)
    auto_tile, vmem_limit = _tile_plan(rows, hw_per_row, itemsize)
    if tile is None:
        tile = auto_tile
    tile = min(tile, hw_per_row)
    if tile < hw_per_row:
        assert tile % 128 == 0, "lane tile must be a multiple of 128"

    num_tiles = (hw_per_row + tile - 1) // tile
    valid_last = hw_per_row - (num_tiles - 1) * tile

    kernel = functools.partial(
        _bce_dice_kernel, rows=rows, tile=tile,
        num_tiles=num_tiles, valid_last=valid_last)

    acc_shape = jax.ShapeDtypeStruct((rows, 1), jnp.float32)
    acc_spec = pl.BlockSpec((rows, 1), lambda s: (0, 0))

    cost = pl.CostEstimate(
        flops=12 * n * c * hw,
        transcendentals=3 * n * c * hw,
        bytes_accessed=int(x2.size * jnp.dtype(logits.dtype).itemsize
                           + t2.size * jnp.dtype(target.dtype).itemsize
                           + 4 * rows * 4),
    )

    grid_spec = pltpu.PrefetchScalarGridSpec(
        num_scalar_prefetch=0,
        grid=(num_tiles,),
        in_specs=[
            pl.BlockSpec((rows, tile), lambda s: (0, s)),
            pl.BlockSpec((rows, tile), lambda s: (0, s)),
        ],
        out_specs=[acc_spec, acc_spec, acc_spec, acc_spec],
    )

    # TODO(synk): v7x megacore -- add a leading "parallel" grid axis splitting
    # the HW tiles across the two TensorCores and sum the per-core (rows, 1)
    # partials in the epilogue below for ~2x on 2-TC chips.
    bce_rows, inter_rows, sin_rows, stg_rows = pl.pallas_call(
        kernel,
        out_shape=(acc_shape, acc_shape, acc_shape, acc_shape),
        grid_spec=grid_spec,
        compiler_params=pltpu.CompilerParams(
            dimension_semantics=("arbitrary",),
            vmem_limit_bytes=vmem_limit,
        ),
        cost_estimate=cost,
    )(x2, t2)

    # Tiny O(N*C) epilogue in plain JAX: fold the G sub-rows back to (N, C)
    # and apply the smooth / divide / channel-select / mean that cannot be
    # computed per-block.
    def _fold(a):
        return a.reshape(n, c, G).sum(axis=-1)

    bce_nc, inter_nc, sin_nc, stg_nc = map(
        _fold, (bce_rows, inter_rows, sin_rows, stg_rows))

    bce = jnp.sum(bce_nc) / float(n * c * hw)
    dice = (2.0 * inter_nc[:, 1:9] + _SMOOTH) / (
        sin_nc[:, 1:9] + stg_nc[:, 1:9] + _SMOOTH)            # (N, 8)
    dice_loss = jnp.sum(jnp.mean(1.0 - dice, axis=0))
    return bce + dice_loss / 8.0


def _reference(logits, target):
    # Pure-JAX reference mirroring the PyTorch forward.
    x = logits.astype(jnp.float32)
    t = target.astype(jnp.float32)
    bce = jnp.mean(jnp.maximum(x, 0.0) - x * t + jnp.log1p(jnp.exp(-jnp.abs(x))))
    sig = jax.nn.sigmoid(x)
    num = x.shape[0]
    dice_loss = 0.0
    for i in range(1, 9):
        xi = sig[:, i, :, :].reshape(num, -1)
        ti = t[:, i, :, :].reshape(num, -1)
        inter = jnp.sum(xi * ti, axis=1)
        dice_i = (2.0 * inter + _SMOOTH) / (
            jnp.sum(xi, axis=1) + jnp.sum(ti, axis=1) + _SMOOTH)
        dice_loss += jnp.mean(1.0 - dice_i)
    return bce + dice_loss / 8.0


if __name__ == "__main__":
    key = jax.random.PRNGKey(0)
    k1, k2, k3, k4 = jax.random.split(key, 4)

    cases = [
        # (shape, tile override, keys): canonical small synapse shape,
        # single full block, no masking, G=1.
        ((2, 9, 16, 16), None, (k1, k2)),
        # G=4 row fold (72 dense rows), 3 blocks of 128 lanes, ragged last.
        ((2, 9, 32, 40), 128, (k3, k4)),
    ]
    for shape, tile_override, (ka, kb) in cases:
        logits = jax.random.normal(ka, shape, dtype=jnp.float32)
        target = jax.random.bernoulli(kb, p=0.3, shape=shape).astype(jnp.float32)

        loss = bce_dice_loss_synapse(logits, target, tile=tile_override)
        loss = jax.block_until_ready(loss)

        ref = _reference(logits, target)
        # Tolerance covers the approximate (EUP) reciprocal in the sigmoid.
        assert jnp.allclose(loss, ref, atol=2e-3, rtol=2e-3), (shape, loss, ref)

    print("KERNEL_OK")
</pallas_src>

<mosaic_0001>
module attributes {stable_mosaic.version = 11 : i64} {
  func.func @_bce_dice_kernel(%arg0: i32, %arg1: memref<18x256xf32, #tpu.memory_space<vmem>>, %arg2: memref<18x256xf32, #tpu.memory_space<vmem>>, %arg3: memref<18x1xf32, #tpu.memory_space<vmem>>, %arg4: memref<18x1xf32, #tpu.memory_space<vmem>>, %arg5: memref<18x1xf32, #tpu.memory_space<vmem>>, %arg6: memref<18x1xf32, #tpu.memory_space<vmem>>) attributes {dimension_semantics = [#tpu.dimension_semantics<arbitrary>], iteration_bounds = array<i64: 1>, scalar_prefetch = 0 : i64, scratch_operands = 0 : i64, tpu.core_type = #tpu.core_type<tc>, window_params = [{transform_indices = @transform_0, window_bounds = array<i64: 18, 256>}, {transform_indices = @transform_1, window_bounds = array<i64: 18, 256>}, {pipeline_mode = #tpu.pipeline_mode<synchronous>, transform_indices = @transform_2, window_bounds = array<i64: 18, 1>}, {pipeline_mode = #tpu.pipeline_mode<synchronous>, transform_indices = @transform_3, window_bounds = array<i64: 18, 1>}, {pipeline_mode = #tpu.pipeline_mode<synchronous>, transform_indices = @transform_4, window_bounds = array<i64: 18, 1>}, {pipeline_mode = #tpu.pipeline_mode<synchronous>, transform_indices = @transform_5, window_bounds = array<i64: 18, 1>}]} {
    %c0_i32 = arith.constant 0 : i32
    %0 = arith.cmpi eq, %arg0, %c0_i32 : i32
    %1 = arith.extui %0 : i1 to i32
    %c0_i32_0 = arith.constant 0 : i32
    %2 = arith.cmpi ne, %1, %c0_i32_0 : i32
    scf.if %2 {
      %cst_27 = arith.constant 0.000000e+00 : f32
      %43 = vector.broadcast %cst_27 : f32 to vector<18x1xf32>
      %c0_28 = arith.constant 0 : index
      %c0_29 = arith.constant 0 : index
      %44 = vector.load %arg3[%c0_28, %c0_29] : memref<18x1xf32, #tpu.memory_space<vmem>>, vector<18x1xf32>
      tpu.vector_store %arg3[%c0_28, %c0_29], %43 {strides = array<i32>} : memref<18x1xf32, #tpu.memory_space<vmem>>, vector<18x1xf32>,
      %cst_30 = arith.constant 0.000000e+00 : f32
      %45 = vector.broadcast %cst_30 : f32 to vector<18x1xf32>
      %c0_31 = arith.constant 0 : index
      %c0_32 = arith.constant 0 : index
      %46 = vector.load %arg4[%c0_31, %c0_32] : memref<18x1xf32, #tpu.memory_space<vmem>>, vector<18x1xf32>
      tpu.vector_store %arg4[%c0_31, %c0_32], %45 {strides = array<i32>} : memref<18x1xf32, #tpu.memory_space<vmem>>, vector<18x1xf32>,
      %cst_33 = arith.constant 0.000000e+00 : f32
      %47 = vector.broadcast %cst_33 : f32 to vector<18x1xf32>
      %c0_34 = arith.constant 0 : index
      %c0_35 = arith.constant 0 : index
      %48 = vector.load %arg5[%c0_34, %c0_35] : memref<18x1xf32, #tpu.memory_space<vmem>>, vector<18x1xf32>
      tpu.vector_store %arg5[%c0_34, %c0_35], %47 {strides = array<i32>} : memref<18x1xf32, #tpu.memory_space<vmem>>, vector<18x1xf32>,
      %cst_36 = arith.constant 0.000000e+00 : f32
      %49 = vector.broadcast %cst_36 : f32 to vector<18x1xf32>
      %c0_37 = arith.constant 0 : index
      %c0_38 = arith.constant 0 : index
      %50 = vector.load %arg6[%c0_37, %c0_38] : memref<18x1xf32, #tpu.memory_space<vmem>>, vector<18x1xf32>
      tpu.vector_store %arg6[%c0_37, %c0_38], %49 {strides = array<i32>} : memref<18x1xf32, #tpu.memory_space<vmem>>, vector<18x1xf32>,
    } else {
    }
    %c0 = arith.constant 0 : index
    %c0_1 = arith.constant 0 : index
    %3 = vector.load %arg1[%c0, %c0_1] : memref<18x256xf32, #tpu.memory_space<vmem>>, vector<18x256xf32>
    %c0_2 = arith.constant 0 : index
    %c0_3 = arith.constant 0 : index
    %4 = vector.load %arg2[%c0_2, %c0_3] : memref<18x256xf32, #tpu.memory_space<vmem>>, vector<18x256xf32>
    %5 = math.absf %3 : vector<18x256xf32>
    %cst = arith.constant 0.000000e+00 : f32
    %6 = vector.broadcast %cst : f32 to vector<18x256xf32>
    %7 = arith.subf %6, %5 : vector<18x256xf32>
    %8 = math.exp %7 : vector<18x256xf32>
    %cst_4 = arith.constant 1.000000e+00 : f32
    %9 = vector.broadcast %cst_4 : f32 to vector<18x256xf32>
    %10 = arith.addf %9, %8 : vector<18x256xf32>
    %11 = math.log %10 : vector<18x256xf32>
    %cst_5 = arith.constant 0.000000e+00 : f32
    %12 = vector.broadcast %cst_5 : f32 to vector<18x256xf32>
    %13 = arith.maximumf %3, %12 : vector<18x256xf32>
    %14 = arith.mulf %3, %4 : vector<18x256xf32>
    %15 = arith.subf %13, %14 : vector<18x256xf32>
    %16 = arith.addf %15, %11 : vector<18x256xf32>
    %17 = tpu.reciprocal %10 {approx = true} : vector<18x256xf32> -> vector<18x256xf32>
    %cst_6 = arith.constant 0.000000e+00 : f32
    %18 = vector.broadcast %cst_6 : f32 to vector<18x256xf32>
    %19 = arith.cmpf oge, %3, %18 : vector<18x256xf32>
    %20 = arith.mulf %8, %17 : vector<18x256xf32>
    %21 = arith.select %19, %17, %20 : vector<18x256xi1>, vector<18x256xf32>
    %c0_7 = arith.constant 0 : index
    %c0_8 = arith.constant 0 : index
    %22 = vector.load %arg3[%c0_7, %c0_8] : memref<18x1xf32, #tpu.memory_space<vmem>>, vector<18x1xf32>
    %cst_9 = arith.constant dense<0.000000e+00> : vector<18xf32>
    %23 = vector.multi_reduction <add>, %16, %cst_9 [1] : vector<18x256xf32> to vector<18xf32>
    %24 = vector.shape_cast %23 : vector<18xf32> to vector<18x1xf32>
    %25 = arith.addf %22, %24 : vector<18x1xf32>
    %c0_10 = arith.constant 0 : index
    %c0_11 = arith.constant 0 : index
    %26 = vector.load %arg3[%c0_10, %c0_11] : memref<18x1xf32, #tpu.memory_space<vmem>>, vector<18x1xf32>
    tpu.vector_store %arg3[%c0_10, %c0_11], %25 {strides = array<i32>} : memref<18x1xf32, #tpu.memory_space<vmem>>, vector<18x1xf32>,
    %c0_12 = arith.constant 0 : index
    %c0_13 = arith.constant 0 : index
    %27 = vector.load %arg4[%c0_12, %c0_13] : memref<18x1xf32, #tpu.memory_space<vmem>>, vector<18x1xf32>
    %28 = arith.mulf %21, %4 : vector<18x256xf32>
    %cst_14 = arith.constant dense<0.000000e+00> : vector<18xf32>
    %29 = vector.multi_reduction <add>, %28, %cst_14 [1] : vector<18x256xf32> to vector<18xf32>
    %30 = vector.shape_cast %29 : vector<18xf32> to vector<18x1xf32>
    %31 = arith.addf %27, %30 : vector<18x1xf32>
    %c0_15 = arith.constant 0 : index
    %c0_16 = arith.constant 0 : index
    %32 = vector.load %arg4[%c0_15, %c0_16] : memref<18x1xf32, #tpu.memory_space<vmem>>, vector<18x1xf32>
    tpu.vector_store %arg4[%c0_15, %c0_16], %31 {strides = array<i32>} : memref<18x1xf32, #tpu.memory_space<vmem>>, vector<18x1xf32>,
    %c0_17 = arith.constant 0 : index
    %c0_18 = arith.constant 0 : index
    %33 = vector.load %arg5[%c0_17, %c0_18] : memref<18x1xf32, #tpu.memory_space<vmem>>, vector<18x1xf32>
    %cst_19 = arith.constant dense<0.000000e+00> : vector<18xf32>
    %34 = vector.multi_reduction <add>, %21, %cst_19 [1] : vector<18x256xf32> to vector<18xf32>
    %35 = vector.shape_cast %34 : vector<18xf32> to vector<18x1xf32>
    %36 = arith.addf %33, %35 : vector<18x1xf32>
    %c0_20 = arith.constant 0 : index
    %c0_21 = arith.constant 0 : index
    %37 = vector.load %arg5[%c0_20, %c0_21] : memref<18x1xf32, #tpu.memory_space<vmem>>, vector<18x1xf32>
    tpu.vector_store %arg5[%c0_20, %c0_21], %36 {strides = array<i32>} : memref<18x1xf32, #tpu.memory_space<vmem>>, vector<18x1xf32>,
    %c0_22 = arith.constant 0 : index
    %c0_23 = arith.constant 0 : index
    %38 = vector.load %arg6[%c0_22, %c0_23] : memref<18x1xf32, #tpu.memory_space<vmem>>, vector<18x1xf32>
    %cst_24 = arith.constant dense<0.000000e+00> : vector<18xf32>
    %39 = vector.multi_reduction <add>, %4, %cst_24 [1] : vector<18x256xf32> to vector<18xf32>
    %40 = vector.shape_cast %39 : vector<18xf32> to vector<18x1xf32>
    %41 = arith.addf %38, %40 : vector<18x1xf32>
    %c0_25 = arith.constant 0 : index
    %c0_26 = arith.constant 0 : index
    %42 = vector.load %arg6[%c0_25, %c0_26] : memref<18x1xf32, #tpu.memory_space<vmem>>, vector<18x1xf32>
    tpu.vector_store %arg6[%c0_25, %c0_26], %41 {strides = array<i32>} : memref<18x1xf32, #tpu.memory_space<vmem>>, vector<18x1xf32>,
    return
  }
  func.func @transform_0(%arg0: i32) -> (i32, i32) {
    %c0_i32 = arith.constant 0 : i32
    %c0_i32_0 = arith.constant 0 : i32
    return %c0_i32, %arg0 : i32, i32
  }
  func.func @transform_1(%arg0: i32) -> (i32, i32) {
    %c0_i32 = arith.constant 0 : i32
    %c0_i32_0 = arith.constant 0 : i32
    return %c0_i32, %arg0 : i32, i32
  }
  func.func @transform_2(%arg0: i32) -> (i32, i32) {
    %c0_i32 = arith.constant 0 : i32
    %c0_i32_0 = arith.constant 0 : i32
    %c0_i32_1 = arith.constant 0 : i32
    return %c0_i32, %c0_i32_0 : i32, i32
  }
  func.func @transform_3(%arg0: i32) -> (i32, i32) {
    %c0_i32 = arith.constant 0 : i32
    %c0_i32_0 = arith.constant 0 : i32
    %c0_i32_1 = arith.constant 0 : i32
    return %c0_i32, %c0_i32_0 : i32, i32
  }
  func.func @transform_4(%arg0: i32) -> (i32, i32) {
    %c0_i32 = arith.constant 0 : i32
    %c0_i32_0 = arith.constant 0 : i32
    %c0_i32_1 = arith.constant 0 : i32
    return %c0_i32, %c0_i32_0 : i32, i32
  }
  func.func @transform_5(%arg0: i32) -> (i32, i32) {
    %c0_i32 = arith.constant 0 : i32
    %c0_i32_0 = arith.constant 0 : i32
    %c0_i32_1 = arith.constant 0 : i32
    return %c0_i32, %c0_i32_0 : i32, i32
  }
}

</mosaic_0001>

<bundles_post_ra>
// kernel: tpu_custom_call.1
= control target key start
LH: loop header
LB: loop body
LE: loop exit
PB: predicated region body
PF: predicated region fallthrough
CT: control target
= control target key end

     0   :  { %11 = vsyncpa [#allocation3], 0  ;;  %s632_s0 = inlined_call_operand.hbm [shape: f32[18,256], index: 0, kind: input, shape index: {}]   ;;  %s633_s1 = inlined_call_operand.hbm [shape: f32[18,256], index: 1, kind: input, shape index: {}]   ;;  %s634_s2 = inlined_call_operand.vmem [shape: f32[18,1], index: 2, kind: output, shape index: {0}]   ;;  %s635_s3 = inlined_call_operand.vmem [shape: f32[18,1], index: 3, kind: output, shape index: {1}]   ;;  %s636_s4 = inlined_call_operand.vmem [shape: f32[18,1], index: 4, kind: output, shape index: {2}]   ;;  %s637_s5 = inlined_call_operand.vmem [shape: f32[18,1], index: 5, kind: output, shape index: {3}]  }
   0x1   :  { %12 = vsyncpa [#allocation5], 0  ;;  %s355_s18 = smov [#allocation2]  }
   0x2   :  { %s18_s19 = sshll.u32 %s355_s18, 4  ;;  %s19_s19 = int_to_ptr.vmem [resolvable:$true] %s18_s19 }
   0x3   :  { %s319_s20 = scalar_lea.vmem %s19_s19, 768  ;;  %p324_p1 = scmp.lt.s32.totalorder %s19_s19, %s19_s19 }
   0x4   :  { %p320_p0 = scmp.ne.s32.totalorder %s19_s19, %s319_s20  ;;  %p325_p2 = scmp.lt.s32.totalorder %s319_s20, %s319_s20 }
   0x6   :  { %p326_p3 = por %p325_p2, %p324_p1 }
   0x8   :  { %p327_p4 = pnand %p326_p3, %p320_p0 }
   0xa   :  { %330 = shalt.err (!%p327_p4)
}
   0xb   :  { %s356_s21 = smov 256   ;;  %s357_s22 = smov 16  }
   0xc   :  { %24 = dma.hbm_to_vmem [thread:$0]  %s632_s0, 768, %s19_s19, [#allocation3], %s356_s21, %s356_s21, %s357_s22  }
   0xd   :  { %s358_s25 = smov [#allocation4]  }
   0xe   :  { %s30_s26 = sshll.u32 %s358_s25, 4  ;;  %s31_s26 = int_to_ptr.vmem [resolvable:$true] %s30_s26 }
   0xf   :  { %s339_s27 = scalar_lea.vmem %s31_s26, 768  ;;  %p344_p6 = scmp.lt.s32.totalorder %s31_s26, %s31_s26 }
  0x10   :  { %p340_p5 = scmp.ne.s32.totalorder %s31_s26, %s339_s27  ;;  %p345_p7 = scmp.lt.s32.totalorder %s339_s27, %s339_s27 }
  0x12   :  { %p346_p8 = por %p345_p7, %p344_p6 }
  0x14   :  { %p347_p9 = pnand %p346_p8, %p340_p5 }
  0x16   :  { %350 = shalt.err (!%p347_p9)
}
  0x17   :  { %36 = dma.hbm_to_vmem [thread:$0]  %s633_s1, 768, %s31_s26, [#allocation5], %s356_s21, %s356_s21, %s357_s22  }
  0x18   :  { %351 = dma.done.wait [#allocation3], 768  }
  0x19   :  { %352 = vsyncadd [#allocation3], 4294966528 }
  0x1a   :  { %353 = dma.done.wait [#allocation5], 768  }
  0x1b   :  { %354 = vsyncadd [#allocation5], 4294966528  ;;  %vm47_vm0 = vcmask 7168   ;;  %v359_v0 = vmov 0.0   ;;  %v436_v1 = vld [vmem:[#allocation4] sm:$0xff]  ;;  %v438_v2 = vld [vmem:[#allocation4 + $0x8] sm:$0xff] }
  0x1c   :  { %58 = vst.msk [vmem:[%s637_s5] sm:$0xff] %vm47_vm0, %v359_v0  ;;  %48 = vst.msk [vmem:[%s634_s2] sm:$0xff] %vm47_vm0, %v359_v0  ;;  %v440_v3 = vld [vmem:[#allocation2] sm:$0xff]  ;;  %v235_v4 = vadd.f32 %v438_v2, %v436_v1  ;;  %v444_v5 = vld [vmem:[#allocation2 + $0x8] sm:$0xff]  ;;  %vm172_vm5 = vcmask 1041408   ;;  %vm50_vm8 = vcmask 1024  }
  0x1d   :  { %49 = vst.msk [vmem:[%s634_s2 + $0x8] sm:$0xff] %vm47_vm0, %v359_v0  ;;  %52 = vst.msk [vmem:[%s635_s3] sm:$0xff] %vm47_vm0, %v359_v0  ;;  %v73_v6 = vand.u32 2147483647, %v440_v3  ;;  %v447_v7 = vld [vmem:[#allocation2 + $0x10] sm:$0xff]  ;;  %v449_v8 = vld [vmem:[#allocation2 + $0x18] sm:$0xff]  ;;  %v121_v42 = vmul.f32 %v436_v1, %v440_v3  ;;  %v122_v43 = vmul.f32 %v438_v2, %v444_v5 }
  0x1e   :  { %53 = vst.msk [vmem:[%s635_s3 + $0x8] sm:$0xff] %vm47_vm0, %v359_v0  ;;  %55 = vst.msk [vmem:[%s636_s4] sm:$0xff] %vm47_vm0, %v359_v0  ;;  %v74_v9 = vand.u32 2147483647, %v444_v5  ;;  %v75_v10 = vand.u32 2147483647, %v447_v7  ;;  %236 = vadd.xlane.f32.xlu1 %v235_v4 }
  0x1f   :  { %56 = vst.msk [vmem:[%s636_s4 + $0x8] sm:$0xff] %vm47_vm0, %v359_v0  ;;  %59 = vst.msk [vmem:[%s637_s5 + $0x8] sm:$0xff] %vm47_vm0, %v359_v0  ;;  %v79_v11 = vsub.f32 0.0, %v73_v6  ;;  %v76_v12 = vand.u32 2147483647, %v449_v8  ;;  %v115_v44 = vmax.f32 %v440_v3, 0.0 }
  0x20   :  { %v80_v13 = vsub.f32 0.0, %v74_v9  ;;  %v81_v14 = vsub.f32 0.0, %v75_v10  ;;  %v454_v15 = vld [vmem:[#allocation2 + $0x20] sm:$0x3]  ;;  %v456_v18 = vld [vmem:[#allocation2 + $0x28] sm:$0x3] }
  0x21   :  { %v85_v16 = vmul.f32 1.442695, %v79_v11  ;;  %v82_v17 = vsub.f32 0.0, %v76_v12  ;;  %v77_v22 = vand.u32 2147483647, %v454_v15  ;;  %v116_v45 = vmax.f32 %v444_v5, 0.0 }
  0x22   :  { %v87_v19 = vmul.f32 1.442695, %v80_v13  ;;  %v89_v20 = vmul.f32 1.442695, %v81_v14  ;;  %v78_v23 = vand.u32 2147483647, %v456_v18  ;;  %v127_v60 = vsub.f32 %v115_v44, %v121_v42 }
  0x23   :  { %275 = vpow2.f32 %v85_v16  ;;  %v91_v21 = vmul.f32 1.442695, %v82_v17  ;;  %v83_v24 = vsub.f32 0.0, %v77_v22  ;;  %v466_v40 = vld [vmem:[#allocation4 + $0x20] sm:$0x3]  ;;  %v476_v46 = vld [vmem:[#allocation4 + $0x10] sm:$0xff]  ;;  %v128_v61 = vsub.f32 %v116_v45, %v122_v43 }
  0x24   :  { %277 = vpow2.f32 %v87_v19  ;;  %v84_v25 = vsub.f32 0.0, %v78_v23  ;;  %v468_v41 = vld [vmem:[#allocation4 + $0x28] sm:$0x3]  ;;  %vm145_vm1 = vcmp.ge.f32.partialorder %v440_v3, 0.0  ;;  %v119_v48 = vmax.f32 %v454_v15, 0.0  ;;  %v490_v62 = vld [vmem:[#allocation4 + $0x18] sm:$0xff] }
  0x25   :  { %279 = vpow2.f32 %v89_v20  ;;  %v93_v26 = vmul.f32 1.442695, %v83_v24  ;;  %v125_v49 = vmul.f32 %v466_v40, %v454_v15  ;;  %vm146_vm2 = vcmp.ge.f32.partialorder %v444_v5, 0.0  ;;  %51 = vst.msk [vmem:[%s634_s2 + $0x10] sm:$0x3] %vm50_vm8, %v359_v0 }
  0x26   :  { %281 = vpow2.f32 %v91_v21  ;;  %v95_v27 = vmul.f32 1.442695, %v84_v25  ;;  %v120_v52 = vmax.f32 %v456_v18, 0.0  ;;  %v126_v53 = vmul.f32 %v468_v41, %v456_v18  ;;  %54 = vst.msk [vmem:[%s635_s3 + $0x10] sm:$0x3] %vm50_vm8, %v359_v0 }
  0x27   :  { %283 = vpow2.f32 %v93_v26  ;;  %vm147_vm3 = vcmp.ge.f32.partialorder %v447_v7, 0.0  ;;  %vm148_vm4 = vcmp.ge.f32.partialorder %v449_v8, 0.0  ;;  %v123_v56 = vmul.f32 %v476_v46, %v447_v7  ;;  %57 = vst.msk [vmem:[%s636_s4 + $0x10] sm:$0x3] %vm50_vm8, %v359_v0  ;;  %60 = vst.msk [vmem:[%s637_s5 + $0x10] sm:$0x3] %vm50_vm8, %v359_v0 }
  0x28   :  { %285 = vpow2.f32 %v95_v27  ;;  %v131_v6 = vsub.f32 %v119_v48, %v125_v49  ;;  %v117_v9 = vmax.f32 %v447_v7, 0.0  ;;  %v132_v14 = vsub.f32 %v120_v52, %v126_v53  ;;  %v212_v0 = vld [vmem:[%s636_s4] sm:$0xff] }
  0x29   :  { %v118_v20 = vmax.f32 %v449_v8, 0.0  ;;  %v124_v5 = vmul.f32 %v490_v62, %v449_v8  ;;  %vm149_vm6 = vcmp.ge.f32.partialorder %v454_v15, 0.0  ;;  %vm150_vm7 = vcmp.ge.f32.partialorder %v456_v18, 0.0 }
  0x2a   :  { %v129_v27 = vsub.f32 %v117_v9, %v123_v56 }
  0x30   :  { %v276_v28 = vpop.eup %275 }
  0x31   :  { %v278_v29 = vpop.eup %277  ;;  %v97_v30 = vadd.f32 1.0, %v276_v28 }
  0x32   :  { %v280_v31 = vpop.eup %279  ;;  %v98_v32 = vadd.f32 1.0, %v278_v29 }
  0x33   :  { %v282_v33 = vpop.eup %281  ;;  %287 = vrcp.f32 %v97_v30  ;;  %v99_v34 = vadd.f32 1.0, %v280_v31 }
  0x34   :  { %289 = vrcp.f32 %v98_v32  ;;  %v100_v35 = vadd.f32 1.0, %v282_v33  ;;  %v460_v36 = vpop.eup %283 }
  0x35   :  { %291 = vrcp.f32 %v99_v34  ;;  %v462_v37 = vpop.eup %285  ;;  %v101_v38 = vadd.f32 1.0, %v460_v36 }
  0x36   :  { %293 = vrcp.f32 %v100_v35  ;;  %v102_v39 = vadd.f32 1.0, %v462_v37 }
  0x37   :  { %295 = vlog2.f32 %v97_v30 }
  0x38   :  { %297 = vlog2.f32 %v98_v32 }
  0x39   :  { %299 = vlog2.f32 %v101_v38 }
  0x3a   :  { %301 = vlog2.f32 %v102_v39 }
  0x3b   :  { %303 = vrcp.f32 %v101_v38 }
  0x3c   :  { %305 = vrcp.f32 %v102_v39 }
  0x3d   :  { %307 = vlog2.f32 %v99_v34 }
  0x3e   :  { %309 = vlog2.f32 %v100_v35 }
  0x40   :  { %v288_v47 = vpop.eup %287 }
  0x41   :  { %v290_v50 = vpop.eup %289  ;;  %v151_v51 = vmul.f32 %v288_v47, %v276_v28 }
  0x42   :  { %v292_v54 = vpop.eup %291  ;;  %v152_v55 = vmul.f32 %v290_v50, %v278_v29 }
  0x43   :  { %v294_v57 = vpop.eup %293  ;;  %v157_v58 = vsel %vm145_vm1, %v288_v47, %v151_v51  ;;  %v153_v59 = vmul.f32 %v292_v54, %v280_v31 }
  0x44   :  { %v296_v63 = vpop.eup %295  ;;  %v158_v3 = vsel %vm146_vm2, %v290_v50, %v152_v55  ;;  %v154_v4 = vmul.f32 %v294_v57, %v282_v33  ;;  %v130_v33 = vsub.f32 %v118_v20, %v124_v5  ;;  %v189_v39 = vmul.f32 %v157_v58, %v436_v1 }
  0x45   :  { %v298_v10 = vpop.eup %297  ;;  %v215_v11 = vadd.f32 %v158_v3, %v157_v58  ;;  %v159_v12 = vsel %vm147_vm3, %v292_v54, %v153_v59  ;;  %v104_v13 = vmul.f32 0.6931472, %v296_v63  ;;  %v190_v38 = vmul.f32 %v158_v3, %v438_v2 }
  0x46   :  { %v300_v16 = vpop.eup %299  ;;  %v160_v17 = vsel %vm148_vm4, %v294_v57, %v154_v4  ;;  %v106_v19 = vmul.f32 0.6931472, %v298_v10  ;;  %v191_v55 = vmul.f32 %v159_v12, %v476_v46  ;;  %v241_v58 = vsel %vm172_vm5, %v466_v40, 0.0  ;;  %v163_v10 = vld [vmem:[%s634_s2] sm:$0xff] }
  0x47   :  { %v302_v21 = vpop.eup %301  ;;  %216 = vadd.xlane.f32.xlu0 %v215_v11  ;;  %v218_v22 = vadd.f32 %v160_v17, %v159_v12  ;;  %v133_v23 = vadd.f32 %v127_v60, %v104_v13  ;;  %v112_v24 = vmul.f32 0.6931472, %v300_v16  ;;  %v195_v50 = vadd.f32 %v190_v38, %v189_v39  ;;  %v165_v13 = vld [vmem:[%s634_s2 + $0x10] sm:$0x3] }
  0x48   :  { %v304_v25 = vpop.eup %303  ;;  %v134_v7 = vadd.f32 %v128_v61, %v106_v19  ;;  %v114_v26 = vmul.f32 0.6931472, %v302_v21  ;;  %v192_v56 = vmul.f32 %v160_v17, %v490_v62  ;;  %v242_v59 = vsel %vm172_vm5, %v468_v41, 0.0  ;;  %v232_v61 = vld [vmem:[%s637_s5] sm:$0xff]  ;;  %v164_v17 = vld [vmem:[%s634_s2 + $0x8] sm:$0xff] }
  0x49   :  { %v306_v28 = vpop.eup %305  ;;  %219 = vadd.xlane.f32.xlu1 %v218_v22  ;;  %v137_v29 = vadd.f32 %v131_v6, %v112_v24  ;;  %v155_v30 = vmul.f32 %v304_v25, %v460_v36  ;;  %v238_v60 = vadd.f32 %v490_v62, %v476_v46  ;;  %v213_v46 = vld [vmem:[%s636_s4 + $0x8] sm:$0xff]  ;;  %v186_v19 = vld [vmem:[%s635_s3] sm:$0xff]  ;;  %v188_v24 = vld [vmem:[%s635_s3 + $0x10] sm:$0x3] }
  0x4a   :  { %v308_v8 = vpop.eup %307  ;;  %v166_v31 = vadd.f32 %v134_v7, %v133_v23  ;;  %v138_v32 = vadd.f32 %v132_v14, %v114_v26  ;;  %v156_v34 = vmul.f32 %v306_v28, %v462_v37  ;;  %v214_v23 = vld [vmem:[%s636_s4 + $0x10] sm:$0x3] }
  0x4b   :  { %v310_v35 = vpop.eup %309  ;;  %v173_v42 = vsel %vm172_vm5, %v137_v29, 0.0  ;;  %v108_v43 = vmul.f32 0.6931472, %v308_v8  ;;  %v161_v36 = vsel %vm149_vm6, %v304_v25, %v155_v30  ;;  %v234_v29 = vld [vmem:[%s637_s5 + $0x10] sm:$0x3] }
  0x4c   :  { %167 = vadd.xlane.f32.xlu0 %v166_v31  ;;  %v174_v44 = vsel %vm172_vm5, %v138_v32, 0.0  ;;  %v110_v45 = vmul.f32 0.6931472, %v310_v35  ;;  %v162_v47 = vsel %vm150_vm7, %v306_v28, %v156_v34  ;;  %v193_v49 = vmul.f32 %v161_v36, %v466_v40  ;;  %v187_v28 = vld [vmem:[%s635_s3 + $0x8] sm:$0xff] }
  0x4d   :  { %v175_v48 = vadd.f32 %v174_v44, %v173_v42  ;;  %v135_v37 = vadd.f32 %v129_v27, %v108_v43  ;;  %v194_v1 = vmul.f32 %v162_v47, %v468_v41  ;;  %v221_v51 = vsel %vm172_vm5, %v161_v36, 0.0 }
  0x4e   :  { %v136_v2 = vadd.f32 %v130_v33, %v110_v45  ;;  %v222_v52 = vsel %vm172_vm5, %v162_v47, 0.0  ;;  %v201_v15 = vsel %vm172_vm5, %v193_v49, 0.0  ;;  %v198_v40 = vadd.f32 %v192_v56, %v191_v55  ;;  %v233_v33 = vld [vmem:[%s637_s5 + $0x8] sm:$0xff] }
  0x4f   :  { %176 = vadd.xlane.f32.xlu1 %v175_v48  ;;  %v202_v54 = vsel %vm172_vm5, %v194_v1, 0.0  ;;  %v223_v18 = vadd.f32 %v222_v52, %v221_v51  ;;  %v243_v41 = vadd.f32 %v242_v59, %v241_v58 }
  0x50   :  { %v169_v53 = vadd.f32 %v136_v2, %v135_v37  ;;  %v203_v57 = vadd.f32 %v202_v54, %v201_v15 }
  0x52   :  { %170 = vadd.xlane.f32.xlu0 %v169_v53 }
  0x53   :  { %196 = vadd.xlane.f32.xlu1 %v195_v50 }
  0x56   :  { %224 = vadd.xlane.f32.xlu0 %v223_v18 }
  0x57   :  { %204 = vadd.xlane.f32.xlu1 %v203_v57 }
  0x5a   :  { %199 = vadd.xlane.f32.xlu0 %v198_v40 }
  0x5b   :  { %244 = vadd.xlane.f32.xlu1 %v243_v41 }
  0x5e   :  { %239 = vadd.xlane.f32.xlu0 %v238_v60 }
  0xa7   :  { %v237_v63 = vpop.xlane.xlu1 %236 }
  0xa8   :  { %v246_v3 = vadd.f32 %v237_v63, %v232_v61 }
  0xaa   :  { %249 = vst.msk [vmem:[%s637_s5] sm:$0xff] %vm47_vm0, %v246_v3 }
  0xd0   :  { %v217_v4 = vpop.xlane.xlu0 %216 }
  0xd1   :  { %v226_v62 = vadd.f32 %v217_v4, %v212_v0 }
  0xd2   :  { %v220_v6 = vpop.xlane.xlu1 %219 }
  0xd3   :  { %229 = vst.msk [vmem:[%s636_s4] sm:$0xff] %vm47_vm0, %v226_v62  ;;  %v227_v9 = vadd.f32 %v220_v6, %v213_v46 }
  0xd5   :  { %230 = vst.msk [vmem:[%s636_s4 + $0x8] sm:$0xff] %vm47_vm0, %v227_v9  ;;  %v168_v11 = vpop.xlane.xlu0 %167 }
  0xd6   :  { %v178_v12 = vadd.f32 %v168_v11, %v163_v10 }
  0xd8   :  { %182 = vst.msk [vmem:[%s634_s2] sm:$0xff] %vm47_vm0, %v178_v12  ;;  %v177_v14 = vpop.xlane.xlu1 %176 }
  0xd9   :  { %v180_v16 = vadd.f32 %v177_v14, %v165_v13 }
  0xdb   :  { %185 = vst.msk [vmem:[%s634_s2 + $0x10] sm:$0x3] %vm50_vm8, %v180_v16  ;;  %v171_v20 = vpop.xlane.xlu0 %170 }
  0xdc   :  { %v179_v5 = vadd.f32 %v171_v20, %v164_v17  ;;  %v197_v21 = vpop.xlane.xlu1 %196 }
  0xdd   :  { %v206_v22 = vadd.f32 %v197_v21, %v186_v19 }
  0xde   :  { %183 = vst.msk [vmem:[%s634_s2 + $0x8] sm:$0xff] %vm47_vm0, %v179_v5 }
  0xdf   :  { %209 = vst.msk [vmem:[%s635_s3] sm:$0xff] %vm47_vm0, %v206_v22  ;;  %v225_v25 = vpop.xlane.xlu0 %224 }
  0xe0   :  { %v228_v7 = vadd.f32 %v225_v25, %v214_v23  ;;  %v205_v26 = vpop.xlane.xlu1 %204 }
  0xe1   :  { %v208_v27 = vadd.f32 %v205_v26, %v188_v24 }
  0xe2   :  { %231 = vst.msk [vmem:[%s636_s4 + $0x10] sm:$0x3] %vm50_vm8, %v228_v7 }
  0xe3   :  { %211 = vst.msk [vmem:[%s635_s3 + $0x10] sm:$0x3] %vm50_vm8, %v208_v27  ;;  %v200_v30 = vpop.xlane.xlu0 %199 }
  0xe4   :  { %v207_v8 = vadd.f32 %v200_v30, %v187_v28  ;;  %v245_v31 = vpop.xlane.xlu1 %244 }
  0xe5   :  { %v248_v32 = vadd.f32 %v245_v31, %v234_v29 }
  0xe6   :  { %210 = vst.msk [vmem:[%s635_s3 + $0x8] sm:$0xff] %vm47_vm0, %v207_v8 }
  0xe7   :  { %251 = vst.msk [vmem:[%s637_s5 + $0x10] sm:$0x3] %vm50_vm8, %v248_v32  ;;  %v240_v34 = vpop.xlane.xlu0 %239 }
  0xe8   :  { %v247_v35 = vadd.f32 %v240_v34, %v233_v33 }
  0xea   :  { %250 = vst.msk [vmem:[%s637_s5 + $0x8] sm:$0xff] %vm47_vm0, %v247_v35 }
  0xeb   :  { %268 = vsyncpa [#allocation3], 1 }
  0xec   :  { %269 = vsyncpa [#allocation5], 1 }

</bundles_post_ra>
